<compile_context>
chip_gen: v5e
topology: v5e:2x2
jax: 0.10.0
libtpu: 0.0.40
codegen_flags: <defaults>
</compile_context>

<pallas_src>
import math
from functools import partial

import jax
import jax.numpy as jnp
from jax.experimental import pallas as pl
from jax.experimental.pallas import tpu as pltpu

_LANES = 128
_MAX_TILE_ROWS = 4096          # 4096 x 128 x 4B = 2 MiB per f32 array per buffer
_MIN_SPLIT_ROWS = 1024         # above this, use >= 2 tiles (v7x dual-TC sharding)
_FAST_PATH_ELEMS = 64 * 1024   # below ~256 KiB of f32, plain XLA beats pallas_call


def _round_up(x, m):
    return -(-x // m) * m


def _sublane_granularity(*dtypes):
    """Second-minor tile granularity covering every dtype streamed
    (f32 -> 8, bf16 -> 16, int8 -> 32 sublanes)."""
    g = 8
    for d in dtypes:
        bits = jnp.dtype(d).itemsize * 8
        g = max(g, 8 * (32 // bits))
    return g


def _choose_tile_rows(rows, granularity):
    if rows <= _MIN_SPLIT_ROWS:
        # Single (possibly partial) tile; reads of the OOB tail are masked.
        return _round_up(rows, granularity)
    # Keep at least 2 tiles so "parallel" can shard across v7x's two TCs,
    # and cap the tile at _MAX_TILE_ROWS.
    n_tiles = max(2, pl.cdiv(rows, _MAX_TILE_ROWS))
    return min(_MAX_TILE_ROWS, _round_up(pl.cdiv(rows, n_tiles), granularity))


def _trace_update_kernel(spikes_ref, traces_ref, out_ref, *, decay, trace_scale):
    # traces_new = traces * decay + trace_scale * s.float()   (additive trace)
    s = spikes_ref[...].astype(jnp.float32)
    tr = traces_ref[...].astype(jnp.float32)
    out_ref[...] = (tr * decay + trace_scale * s).astype(out_ref.dtype)


def input_population_forward(spikes_in, traces_state, *, dt, tau_s=10.0,
                             trace_scale=1.0, donate_traces=False,
                             min_pallas_elems=_FAST_PATH_ELEMS):
    """One simulation step of InputPopulation.

    spikes_in    : array of population shape (user-defined spikes; bool/int/float)
    traces_state : float array of population shape (current spike traces)
    Returns (s_new, traces_new).  s_new is `spikes_in` itself (self.s = traces);
    traces_new has the trace dtype (f32 / bf16) and population shape.
    """
    pop_shape = spikes_in.shape
    n = math.prod(pop_shape)

    # compute_decay(), hoisted to trace time as a Python constant.
    decay = math.exp(-float(dt) / float(tau_s))
    trace_scale = float(trace_scale)

    out_dtype = (traces_state.dtype
                 if traces_state.dtype in (jnp.float32, jnp.bfloat16)
                 else jnp.float32)

    # Tiny populations: fused XLA elementwise op is faster than the pallas_call
    # fixed overhead + wrapper reshapes.
    if n < min_pallas_elems:
        traces_new = (traces_state.astype(jnp.float32) * decay
                      + trace_scale * spikes_in.astype(jnp.float32)
                      ).astype(out_dtype)
        return spikes_in, traces_new

    # Spikes: stream narrow dtypes as-is and upcast in-kernel.
    if spikes_in.dtype == jnp.bool_:
        # TODO(synk): pass bool straight through (i1 VMEM loads) once verified
        # on the target jax version; int8 keeps spike traffic at 1 B/elem.
        spikes_flat = spikes_in.reshape(-1).astype(jnp.int8)
    elif spikes_in.dtype in (jnp.int8, jnp.bfloat16, jnp.float32):
        spikes_flat = spikes_in.reshape(-1)
    else:
        spikes_flat = spikes_in.reshape(-1).astype(jnp.float32)

    if traces_state.dtype in (jnp.float32, jnp.bfloat16):
        traces_flat = traces_state.reshape(-1)
    else:
        traces_flat = traces_state.reshape(-1).astype(jnp.float32)

    # Pad only to the 128-lane boundary (<= 127 elements); zero in the common
    # aligned case so no HBM copies are materialized.
    pad = (-n) % _LANES
    if pad:
        spikes_flat = jnp.pad(spikes_flat, (0, pad))
        traces_flat = jnp.pad(traces_flat, (0, pad))
    rows = (n + pad) // _LANES

    spikes_2d = spikes_flat.reshape(rows, _LANES)
    traces_2d = traces_flat.reshape(rows, _LANES)

    gran = _sublane_granularity(spikes_2d.dtype, traces_2d.dtype, out_dtype)
    tile_rows = _choose_tile_rows(rows, gran)
    grid = (pl.cdiv(rows, tile_rows),)   # partial last block is masked by Pallas

    io_aliases = {}
    if donate_traces and traces_2d.dtype == jnp.dtype(out_dtype):
        io_aliases = {1: 0}              # traces input buffer <- traces output

    kernel = partial(_trace_update_kernel, decay=decay, trace_scale=trace_scale)

    traces_new_2d = pl.pallas_call(
        kernel,
        out_shape=jax.ShapeDtypeStruct((rows, _LANES), out_dtype),
        grid=grid,
        in_specs=[
            pl.BlockSpec((tile_rows, _LANES), lambda i: (i, 0)),
            pl.BlockSpec((tile_rows, _LANES), lambda i: (i, 0)),
        ],
        out_specs=pl.BlockSpec((tile_rows, _LANES), lambda i: (i, 0)),
        input_output_aliases=io_aliases,
        compiler_params=pltpu.CompilerParams(
            dimension_semantics=("parallel",),
            vmem_limit_bytes=32 * 1024 * 1024,
        ),
    )(spikes_2d, traces_2d)

    if pad:
        traces_new = traces_new_2d.reshape(-1)[:n].reshape(pop_shape)
    else:
        traces_new = traces_new_2d.reshape(pop_shape)   # free reshape

    # s_new is the input spike tensor itself (self.s = traces).
    return spikes_in, traces_new


if __name__ == "__main__":
    key = jax.random.PRNGKey(0)
    k1, k2, k3, k4, k5, k6 = jax.random.split(key, 6)

    dt, tau_s, trace_scale = 1.0, 10.0, 1.0
    decay_ref = math.exp(-dt / tau_s)

    # --- test 1: small population, float spikes, lane-aligned (n % 128 == 0),
    #             forced through the Pallas path (single full-extent tile) ----
    shape1 = (4, 16, 16)
    spk1 = (jax.random.uniform(k1, shape1) < 0.3).astype(jnp.float32)
    tr1 = jax.random.uniform(k2, shape1, dtype=jnp.float32)
    s1, new1 = input_population_forward(spk1, tr1, dt=dt, tau_s=tau_s,
                                        trace_scale=trace_scale,
                                        min_pallas_elems=0)
    jax.block_until_ready((s1, new1))
    exp1 = tr1 * decay_ref + trace_scale * spk1
    assert s1.dtype == spk1.dtype and jnp.allclose(s1, spk1)
    assert jnp.allclose(new1, exp1, atol=1e-6)

    # --- test 2: non-128-aligned population with bool spikes (int8 stream,
    #             partial last block) ---------------------------------------
    shape2 = (3, 50, 70)
    spk2 = jax.random.uniform(k3, shape2) < 0.2            # bool spikes
    tr2 = jax.random.uniform(k4, shape2, dtype=jnp.float32)
    s2, new2 = input_population_forward(spk2, tr2, dt=dt, tau_s=tau_s,
                                        trace_scale=trace_scale,
                                        min_pallas_elems=0)
    jax.block_until_ready((s2, new2))
    exp2 = tr2 * decay_ref + trace_scale * spk2.astype(jnp.float32)
    assert s2.dtype == spk2.dtype and jnp.array_equal(s2, spk2)
    assert jnp.allclose(new2, exp2, atol=1e-6)

    # --- test 3: multi-tile grid (>= 2 tiles -> dual-TC sharding on v7x) with
    #             in-place trace update via input_output_aliases -------------
    shape3 = (16, 128, 96)                                  # 1536 rows of 128
    spk3 = (jax.random.uniform(k5, shape3) < 0.1).astype(jnp.float32)
    tr3 = jax.random.uniform(k6, shape3, dtype=jnp.float32)
    exp3 = tr3 * decay_ref + trace_scale * spk3
    s3, new3 = input_population_forward(spk3, tr3, dt=dt, tau_s=tau_s,
                                        trace_scale=trace_scale,
                                        min_pallas_elems=0, donate_traces=True)
    jax.block_until_ready((s3, new3))
    assert jnp.allclose(new3, exp3, atol=1e-6)

    # --- test 4: default small-population fast path (plain XLA, no Pallas) ---
    s4, new4 = input_population_forward(spk1, tr1, dt=dt, tau_s=tau_s,
                                        trace_scale=trace_scale)
    jax.block_until_ready((s4, new4))
    assert jnp.allclose(new4, exp1, atol=1e-6)

    print("KERNEL_OK")
</pallas_src>

<mosaic_0001>
module attributes {stable_mosaic.version = 11 : i64} {
  func.func @_trace_update_kernel(%arg0: i32, %arg1: memref<8x128xf32, #tpu.memory_space<vmem>>, %arg2: memref<8x128xf32, #tpu.memory_space<vmem>>, %arg3: memref<8x128xf32, #tpu.memory_space<vmem>>) attributes {dimension_semantics = [#tpu.dimension_semantics<parallel>], iteration_bounds = array<i64: 1>, scalar_prefetch = 0 : i64, scratch_operands = 0 : i64, tpu.core_type = #tpu.core_type<tc>, window_params = [{transform_indices = @transform_0, window_bounds = array<i64: 8, 128>}, {transform_indices = @transform_1, window_bounds = array<i64: 8, 128>}, {transform_indices = @transform_2, window_bounds = array<i64: 8, 128>}]} {
    %c0 = arith.constant 0 : index
    %c0_0 = arith.constant 0 : index
    %0 = vector.load %arg1[%c0, %c0_0] : memref<8x128xf32, #tpu.memory_space<vmem>>, vector<8x128xf32>
    %c0_1 = arith.constant 0 : index
    %c0_2 = arith.constant 0 : index
    %1 = vector.load %arg2[%c0_1, %c0_2] : memref<8x128xf32, #tpu.memory_space<vmem>>, vector<8x128xf32>
    %cst = arith.constant 0.904837429 : f32
    %2 = vector.broadcast %cst : f32 to vector<8x128xf32>
    %3 = arith.mulf %1, %2 : vector<8x128xf32>
    %cst_3 = arith.constant 1.000000e+00 : f32
    %4 = vector.broadcast %cst_3 : f32 to vector<8x128xf32>
    %5 = arith.mulf %4, %0 : vector<8x128xf32>
    %6 = arith.addf %3, %5 : vector<8x128xf32>
    %c0_4 = arith.constant 0 : index
    %c0_5 = arith.constant 0 : index
    %7 = vector.load %arg3[%c0_4, %c0_5] : memref<8x128xf32, #tpu.memory_space<vmem>>, vector<8x128xf32>
    tpu.vector_store %arg3[%c0_4, %c0_5], %6 {strides = array<i32>} : memref<8x128xf32, #tpu.memory_space<vmem>>, vector<8x128xf32>,
    return
  }
  func.func @transform_0(%arg0: i32) -> (i32, i32) {
    %c0_i32 = arith.constant 0 : i32
    %c0_i32_0 = arith.constant 0 : i32
    return %arg0, %c0_i32 : i32, i32
  }
  func.func @transform_1(%arg0: i32) -> (i32, i32) {
    %c0_i32 = arith.constant 0 : i32
    %c0_i32_0 = arith.constant 0 : i32
    return %arg0, %c0_i32 : i32, i32
  }
  func.func @transform_2(%arg0: i32) -> (i32, i32) {
    %c0_i32 = arith.constant 0 : i32
    %c0_i32_0 = arith.constant 0 : i32
    return %arg0, %c0_i32 : i32, i32
  }
}

</mosaic_0001>

<bundles_post_ra>
// kernel: tpu_custom_call.1
= control target key start
LH: loop header
LB: loop body
LE: loop exit
PB: predicated region body
PF: predicated region fallthrough
CT: control target
= control target key end

     0   :  { %7 = vsyncpa [#allocation3], 0  ;;  %s171_s0 = inlined_call_operand.hbm [shape: f32[8,128], index: 0, kind: input, shape index: {}]   ;;  %s172_s1 = inlined_call_operand.hbm [shape: f32[8,128], index: 1, kind: input, shape index: {}]   ;;  %s173_s2 = inlined_call_operand.hbm [shape: f32[8,128], index: 2, kind: output, shape index: {}]  }
   0x1   :  { %8 = vsyncpa [#allocation6], 0 }
   0x2   :  { %9 = vsyncpa [#allocation4], 0  ;;  %s15_s11 = sshll.u32 %s171_s0, 4  ;;  %s144_s12 = smov [#allocation2]   ;;  %s16_s11 = int_to_ptr.hbm [resolvable:$true] %s15_s11 }
   0x3   :  { %s17_s13 = sshll.u32 %s144_s12, 4  ;;  %s26_s16 = sshll.u32 %s172_s1, 4  ;;  %s18_s13 = int_to_ptr.vmem [resolvable:$true] %s17_s13  ;;  %s27_s16 = int_to_ptr.hbm [resolvable:$true] %s26_s16 }
   0x4   :  { %20 = dma.hbm_to_vmem [thread:$0]  %s16_s11, 128, %s18_s13, [#allocation3]  }
   0x5   :  { %s145_s17 = smov [#allocation5]  }
   0x6   :  { %s28_s18 = sshll.u32 %s145_s17, 4  ;;  %s29_s18 = int_to_ptr.vmem [resolvable:$true] %s28_s18 }
   0x7   :  { %31 = dma.hbm_to_vmem [thread:$0]  %s27_s16, 128, %s29_s18, [#allocation6]  }
   0x8   :  { %138 = dma.done.wait [#allocation3], 128  }
   0x9   :  { %139 = vsyncadd [#allocation3], 4294967168 }
   0xa   :  { %140 = dma.done.wait [#allocation6], 128  }
   0xb   :  { %141 = vsyncadd [#allocation6], 4294967168  ;;  %v40_v0 = vld [vmem:[#allocation2] sm:$0xff]  ;;  %v41_v1 = vld [vmem:[#allocation5] sm:$0xff]  ;;  %s146_s0 = smov [#allocation7]   ;;  %s52_s22 = sshll.u32 %s173_s2, 4  ;;  %s53_s22 = int_to_ptr.hbm [resolvable:$true] %s52_s22 }
   0xc   :  { %s50_s19 = sshll.u32 %s146_s0, 4  ;;  %v42_v2 = vmul.f32 0.9048374, %v41_v1  ;;  %s51_s19 = int_to_ptr.vmem [resolvable:$true] %s50_s19 }
   0xe   :  { %v43_v3 = vadd.f32 %v42_v2, %v40_v0 }
  0x10   :  { %44 = vst [vmem:[#allocation7] sm:$0xff] %v43_v3 }
  0x11   :  { %55 = dma.vmem_to_hbm [thread:$0]  %s51_s19, 128, %s53_s22, [#allocation4]  }
  0x12   :  { %142 = dma.done.wait [#allocation4], 128  }
  0x13   :  { %143 = vsyncadd [#allocation4], 4294967168 }
  0x14   :  { %60 = vsyncpa [#allocation3], 1 }
  0x15   :  { %61 = vsyncpa [#allocation6], 1 }
  0x16   :  { %62 = vsyncpa [#allocation4], 1 }

</bundles_post_ra>
